<compile_context>
chip_gen: v7x
topology: tpu7x:2x2x1
jax: 0.10.0
libtpu: 0.0.40
codegen_flags: <defaults>
</compile_context>

<pallas_src>
import jax
import jax.numpy as jnp
from jax.experimental import pallas as pl
from jax.experimental.pallas import tpu as pltpu

# ---- small shapes consistent with the module ------------------------------
B = 2                      # batch
N = 8                      # tokens
C = 32                     # embedding dim
NUM_HEADS = 4
HEAD_DIM = C // NUM_HEADS
G = B * NUM_HEADS          # flat (head, batch) groups inside the kernel (g = h*B + b)
SCALE = HEAD_DIM ** (-0.5)
KEEP_RATE = 1.0            # module default -> token-keep branch inactive
# TODO(synk): the 0<keep_rate<1 branch (topk over cls attention + complement_idx)
# is host-side index bookkeeping and is intentionally not implemented (inactive
# at the default keep_rate=1.0; forward returns idx=None, rest_index=None).
# attn_drop / proj_drop default to p=0.0 -> identity, omitted.


def attention_kernel(x_ref, wqkv_ref, wproj_ref, bproj_ref, o_ref):
    # x_ref:    (B*N, C)   bf16   (token-major 2-D slab)
    # wqkv_ref: (C, 3C)    bf16   (qk scale folded into the first C columns)
    # wproj_ref:(C, C)     bf16
    # bproj_ref:(1, C)     f32
    # o_ref:    (B*N, C)   f32
    x = x_ref[...]                                                    # (BN, C) bf16

    # --- fused QKV projection: one MXU push, f32 accumulate ---------------
    qkv = jnp.dot(x, wqkv_ref[...],
                  preferred_element_type=jnp.float32)                 # (BN, 3C) f32

    # --- per-head q/k/v: static lane slices + leading-dim reshape ---------
    # group order g = h*B + b  (head-major), rows inside a group are tokens.
    def split_heads(col_off):
        cols = [qkv[:, col_off + h * HEAD_DIM: col_off + (h + 1) * HEAD_DIM]
                for h in range(NUM_HEADS)]                            # H x (BN, Dh)
        stacked = jnp.stack(cols, axis=0)                             # (H, BN, Dh)
        # (H, B*N, Dh) -> (H*B, N, Dh): splits the sublane dim at the 8-row
        # tile boundary and merges into the leading dim only (layout-clean).
        return stacked.reshape(G, N, HEAD_DIM)

    q = split_heads(0).astype(jnp.bfloat16)                           # (G, N, Dh)
    k = split_heads(C).astype(jnp.bfloat16)
    v = split_heads(2 * C).astype(jnp.bfloat16)

    # --- attention scores + softmax (f32 elementwise, exact reciprocal) ---
    s = jnp.einsum('gnd,gmd->gnm', q, k,
                   preferred_element_type=jnp.float32)                # (G, N, N)
    s = s - jnp.max(s, axis=-1, keepdims=True)
    p = jnp.exp(s)
    p = p / jnp.sum(p, axis=-1, keepdims=True)

    ctx = jnp.einsum('gnm,gmd->gnd', p.astype(jnp.bfloat16), v,
                     preferred_element_type=jnp.float32)              # (G, N, Dh) f32

    # --- reassemble heads onto contiguous lanes: (H, BN, Dh) -> (BN, C) ---
    ctx_h = ctx.reshape(NUM_HEADS, B * N, HEAD_DIM)                   # leading-dim only
    ctx2d = jnp.concatenate([ctx_h[h] for h in range(NUM_HEADS)],
                            axis=-1)                                  # (BN, C)

    # --- single output projection + bias -----------------------------------
    out = jnp.dot(ctx2d.astype(jnp.bfloat16), wproj_ref[...],
                  preferred_element_type=jnp.float32)                 # (BN, C) f32
    out = out + bproj_ref[...]                                        # (1, C) broadcast
    o_ref[...] = out.astype(o_ref.dtype)


# ------------------------- wrapper ------------------------------------------
def attention_forward(x, kernel_params):
    wqkv_b, wproj_b, bproj = kernel_params
    Bx, Nx, Cx = x.shape

    # lane-dense 2-D slab in / out; bf16 matmul operands into the kernel.
    x2d = x.reshape(Bx * Nx, Cx).astype(jnp.bfloat16)

    flops = 2 * (Bx * Nx * Cx * 3 * Cx                      # fused QKV projection
                 + (Bx * NUM_HEADS) * Nx * Nx * HEAD_DIM * 2  # scores + PV
                 + Bx * Nx * Cx * Cx)                        # output projection
    bytes_accessed = (Bx * Nx * Cx * 2 + Cx * 3 * Cx * 2
                      + Cx * Cx * 2 + Cx * 4 + Bx * Nx * Cx * 4)
    cost = pl.CostEstimate(flops=flops,
                           transcendentals=Bx * NUM_HEADS * Nx * Nx,
                           bytes_accessed=bytes_accessed)

    out2d = pl.pallas_call(
        attention_kernel,
        out_shape=jax.ShapeDtypeStruct((Bx * Nx, Cx), jnp.float32),
        in_specs=[pl.BlockSpec(memory_space=pltpu.MemorySpace.VMEM)] * 4,
        out_specs=pl.BlockSpec(memory_space=pltpu.MemorySpace.VMEM),
        cost_estimate=cost,
    )(x2d, wqkv_b, wproj_b, bproj)

    out = out2d.reshape(Bx, Nx, Cx).astype(x.dtype)
    # keep_rate == 1.0 -> PyTorch module returns (x, None, None)
    return out, None, None


# ------------------------- parameter init / host-side prep -------------------
def init_params(key):
    """Parameters in the PyTorch module's native layout (qkv_bias=False)."""
    ks = jax.random.split(key, 3)
    s = 0.02
    wqkv = s * jax.random.normal(ks[0], (C, 3 * C), jnp.float32)
    wproj = s * jax.random.normal(ks[1], (C, C), jnp.float32)
    bproj = s * jax.random.normal(ks[2], (1, C), jnp.float32)
    return wqkv, wproj, bproj


def prepare_params(wqkv, wproj, bproj):
    """One-time host-side prep: fold qk scale into the Q columns, cast matmul
    operands to bf16 (MXU-native on v6e/v7x, halves weight DMA bytes). Weights
    are NOT duplicated per batch or per head."""
    wqkv_fused = jnp.concatenate([wqkv[:, :C] * SCALE, wqkv[:, C:]], axis=1)
    return (wqkv_fused.astype(jnp.bfloat16),
            wproj.astype(jnp.bfloat16),
            bproj.astype(jnp.float32))


# ------------------------- pure-JAX reference (module semantics) -------------
def attention_reference(x, wqkv, wproj, bproj):
    Bb, Nn, Cc = x.shape
    qkv = x @ wqkv                                                     # (B, N, 3C)
    qkv = qkv.reshape(Bb, Nn, 3, NUM_HEADS, HEAD_DIM).transpose(2, 0, 3, 1, 4)
    q, k, v = qkv[0], qkv[1], qkv[2]                                   # (B, H, N, Dh)
    attn = jnp.einsum('bhnd,bhmd->bhnm', q, k) * SCALE
    attn = jax.nn.softmax(attn, axis=-1)
    o = jnp.einsum('bhnm,bhmd->bhnd', attn, v)
    o = o.transpose(0, 2, 1, 3).reshape(Bb, Nn, Cc)
    return o @ wproj + bproj[0]


if __name__ == "__main__":
    key = jax.random.PRNGKey(0)
    kx, kp = jax.random.split(key)
    x = jax.random.normal(kx, (B, N, C), jnp.float32)

    wqkv, wproj, bproj = init_params(kp)
    kernel_params = prepare_params(wqkv, wproj, bproj)

    out, idx, rest_index = attention_forward(x, kernel_params)
    out = jax.block_until_ready(out)

    ref = attention_reference(x, wqkv, wproj, bproj)
    assert out.shape == (B, N, C)
    assert idx is None and rest_index is None
    # tolerance accounts for bf16 matmul operands (f32 accumulation everywhere)
    max_err = float(jnp.max(jnp.abs(out - ref)))
    assert jnp.allclose(out, ref, atol=5e-3, rtol=5e-3), max_err
    print("KERNEL_OK")
</pallas_src>

<mosaic_0001>
module attributes {stable_mosaic.version = 11 : i64} {
  func.func @attention_kernel(%arg0: memref<16x32xbf16, #tpu.memory_space<vmem>>, %arg1: memref<32x96xbf16, #tpu.memory_space<vmem>>, %arg2: memref<32x32xbf16, #tpu.memory_space<vmem>>, %arg3: memref<1x32xf32, #tpu.memory_space<vmem>>, %arg4: memref<16x32xf32, #tpu.memory_space<vmem>>) attributes {dimension_semantics = [], scalar_prefetch = 0 : i64, scratch_operands = 0 : i64, tpu.core_type = #tpu.core_type<tc>} {
    %c0 = arith.constant 0 : index
    %c0_0 = arith.constant 0 : index
    %0 = vector.load %arg0[%c0, %c0_0] : memref<16x32xbf16, #tpu.memory_space<vmem>>, vector<16x32xbf16>
    %c0_1 = arith.constant 0 : index
    %c0_2 = arith.constant 0 : index
    %1 = vector.load %arg1[%c0_1, %c0_2] : memref<32x96xbf16, #tpu.memory_space<vmem>>, vector<32x96xbf16>
    %cst = arith.constant dense<0.000000e+00> : vector<16x96xf32>
    %2 = tpu.matmul %0, %1, %cst {dimension_numbers = #tpu.dot_dimension_numbers<[1], [0], [0], [1], [0, 0, 1, 1], [], []>} : vector<16x32xbf16>, vector<32x96xbf16>, vector<16x96xf32> -> vector<16x96xf32>
    %3 = vector.extract_strided_slice %2 {offsets = [0, 0], sizes = [16, 8], strides = [1, 1]} : vector<16x96xf32> to vector<16x8xf32>
    %4 = vector.extract_strided_slice %2 {offsets = [0, 8], sizes = [16, 8], strides = [1, 1]} : vector<16x96xf32> to vector<16x8xf32>
    %5 = vector.extract_strided_slice %2 {offsets = [0, 16], sizes = [16, 8], strides = [1, 1]} : vector<16x96xf32> to vector<16x8xf32>
    %6 = vector.extract_strided_slice %2 {offsets = [0, 24], sizes = [16, 8], strides = [1, 1]} : vector<16x96xf32> to vector<16x8xf32>
    %7 = vector.shape_cast %3 : vector<16x8xf32> to vector<1x16x8xf32>
    %8 = vector.shape_cast %4 : vector<16x8xf32> to vector<1x16x8xf32>
    %9 = vector.shape_cast %5 : vector<16x8xf32> to vector<1x16x8xf32>
    %10 = vector.shape_cast %6 : vector<16x8xf32> to vector<1x16x8xf32>
    %11 = tpu.concatenate %7, %8, %9, %10 in 0 : vector<1x16x8xf32>, vector<1x16x8xf32>, vector<1x16x8xf32>, vector<1x16x8xf32> -> vector<4x16x8xf32>
    %12 = vector.shape_cast %11 : vector<4x16x8xf32> to vector<8x8x8xf32>
    %13 = arith.truncf %12 : vector<8x8x8xf32> to vector<8x8x8xbf16>
    %14 = vector.extract_strided_slice %2 {offsets = [0, 32], sizes = [16, 8], strides = [1, 1]} : vector<16x96xf32> to vector<16x8xf32>
    %15 = vector.extract_strided_slice %2 {offsets = [0, 40], sizes = [16, 8], strides = [1, 1]} : vector<16x96xf32> to vector<16x8xf32>
    %16 = vector.extract_strided_slice %2 {offsets = [0, 48], sizes = [16, 8], strides = [1, 1]} : vector<16x96xf32> to vector<16x8xf32>
    %17 = vector.extract_strided_slice %2 {offsets = [0, 56], sizes = [16, 8], strides = [1, 1]} : vector<16x96xf32> to vector<16x8xf32>
    %18 = vector.shape_cast %14 : vector<16x8xf32> to vector<1x16x8xf32>
    %19 = vector.shape_cast %15 : vector<16x8xf32> to vector<1x16x8xf32>
    %20 = vector.shape_cast %16 : vector<16x8xf32> to vector<1x16x8xf32>
    %21 = vector.shape_cast %17 : vector<16x8xf32> to vector<1x16x8xf32>
    %22 = tpu.concatenate %18, %19, %20, %21 in 0 : vector<1x16x8xf32>, vector<1x16x8xf32>, vector<1x16x8xf32>, vector<1x16x8xf32> -> vector<4x16x8xf32>
    %23 = vector.shape_cast %22 : vector<4x16x8xf32> to vector<8x8x8xf32>
    %24 = arith.truncf %23 : vector<8x8x8xf32> to vector<8x8x8xbf16>
    %25 = vector.extract_strided_slice %2 {offsets = [0, 64], sizes = [16, 8], strides = [1, 1]} : vector<16x96xf32> to vector<16x8xf32>
    %26 = vector.extract_strided_slice %2 {offsets = [0, 72], sizes = [16, 8], strides = [1, 1]} : vector<16x96xf32> to vector<16x8xf32>
    %27 = vector.extract_strided_slice %2 {offsets = [0, 80], sizes = [16, 8], strides = [1, 1]} : vector<16x96xf32> to vector<16x8xf32>
    %28 = vector.extract_strided_slice %2 {offsets = [0, 88], sizes = [16, 8], strides = [1, 1]} : vector<16x96xf32> to vector<16x8xf32>
    %29 = vector.shape_cast %25 : vector<16x8xf32> to vector<1x16x8xf32>
    %30 = vector.shape_cast %26 : vector<16x8xf32> to vector<1x16x8xf32>
    %31 = vector.shape_cast %27 : vector<16x8xf32> to vector<1x16x8xf32>
    %32 = vector.shape_cast %28 : vector<16x8xf32> to vector<1x16x8xf32>
    %33 = tpu.concatenate %29, %30, %31, %32 in 0 : vector<1x16x8xf32>, vector<1x16x8xf32>, vector<1x16x8xf32>, vector<1x16x8xf32> -> vector<4x16x8xf32>
    %34 = vector.shape_cast %33 : vector<4x16x8xf32> to vector<8x8x8xf32>
    %35 = arith.truncf %34 : vector<8x8x8xf32> to vector<8x8x8xbf16>
    "tpu.trace_start"() <{level = 10 : i32, message = "gnd,gmd->gnm"}> : () -> ()
    %cst_3 = arith.constant dense<0.000000e+00> : vector<8x8x8xf32>
    %36 = tpu.matmul %13, %24, %cst_3 {dimension_numbers = #tpu.dot_dimension_numbers<[2], [2], [1], [1], [0, 0, 0, 1, 1, 1], [0], [0]>} : vector<8x8x8xbf16>, vector<8x8x8xbf16>, vector<8x8x8xf32> -> vector<8x8x8xf32>
    "tpu.trace_stop"() : () -> ()
    %cst_4 = arith.constant dense<0xFF800000> : vector<8x8xf32>
    %37 = vector.multi_reduction <maximumf>, %36, %cst_4 [2] : vector<8x8x8xf32> to vector<8x8xf32>
    %38 = vector.shape_cast %37 : vector<8x8xf32> to vector<8x8x1xf32>
    %39 = vector.broadcast %38 : vector<8x8x1xf32> to vector<8x8x8xf32>
    %40 = arith.subf %36, %39 : vector<8x8x8xf32>
    %41 = math.exp %40 : vector<8x8x8xf32>
    %cst_5 = arith.constant dense<0.000000e+00> : vector<8x8xf32>
    %42 = vector.multi_reduction <add>, %41, %cst_5 [2] : vector<8x8x8xf32> to vector<8x8xf32>
    %43 = vector.shape_cast %42 : vector<8x8xf32> to vector<8x8x1xf32>
    %44 = vector.broadcast %43 : vector<8x8x1xf32> to vector<8x8x8xf32>
    %45 = arith.divf %41, %44 : vector<8x8x8xf32>
    %46 = arith.truncf %45 : vector<8x8x8xf32> to vector<8x8x8xbf16>
    "tpu.trace_start"() <{level = 10 : i32, message = "gnm,gmd->gnd"}> : () -> ()
    %cst_6 = arith.constant dense<0.000000e+00> : vector<8x8x8xf32>
    %47 = tpu.matmul %46, %35, %cst_6 {dimension_numbers = #tpu.dot_dimension_numbers<[2], [1], [1], [2], [0, 0, 0, 1, 1, 2], [0], [0]>} : vector<8x8x8xbf16>, vector<8x8x8xbf16>, vector<8x8x8xf32> -> vector<8x8x8xf32>
    "tpu.trace_stop"() : () -> ()
    %48 = vector.shape_cast %47 : vector<8x8x8xf32> to vector<4x16x8xf32>
    %49 = vector.extract_strided_slice %48 {offsets = [0, 0, 0], sizes = [1, 16, 8], strides = [1, 1, 1]} : vector<4x16x8xf32> to vector<1x16x8xf32>
    %50 = vector.shape_cast %49 : vector<1x16x8xf32> to vector<16x8xf32>
    %51 = vector.extract_strided_slice %48 {offsets = [1, 0, 0], sizes = [1, 16, 8], strides = [1, 1, 1]} : vector<4x16x8xf32> to vector<1x16x8xf32>
    %52 = vector.shape_cast %51 : vector<1x16x8xf32> to vector<16x8xf32>
    %53 = vector.extract_strided_slice %48 {offsets = [2, 0, 0], sizes = [1, 16, 8], strides = [1, 1, 1]} : vector<4x16x8xf32> to vector<1x16x8xf32>
    %54 = vector.shape_cast %53 : vector<1x16x8xf32> to vector<16x8xf32>
    %55 = vector.extract_strided_slice %48 {offsets = [3, 0, 0], sizes = [1, 16, 8], strides = [1, 1, 1]} : vector<4x16x8xf32> to vector<1x16x8xf32>
    %56 = vector.shape_cast %55 : vector<1x16x8xf32> to vector<16x8xf32>
    %57 = tpu.concatenate %50, %52, %54, %56 in 1 : vector<16x8xf32>, vector<16x8xf32>, vector<16x8xf32>, vector<16x8xf32> -> vector<16x32xf32>
    %58 = arith.truncf %57 : vector<16x32xf32> to vector<16x32xbf16>
    %c0_7 = arith.constant 0 : index
    %c0_8 = arith.constant 0 : index
    %59 = vector.load %arg2[%c0_7, %c0_8] : memref<32x32xbf16, #tpu.memory_space<vmem>>, vector<32x32xbf16>
    %cst_9 = arith.constant dense<0.000000e+00> : vector<16x32xf32>
    %60 = tpu.matmul %58, %59, %cst_9 {dimension_numbers = #tpu.dot_dimension_numbers<[1], [0], [0], [1], [0, 0, 1, 1], [], []>} : vector<16x32xbf16>, vector<32x32xbf16>, vector<16x32xf32> -> vector<16x32xf32>
    %c0_10 = arith.constant 0 : index
    %c0_11 = arith.constant 0 : index
    %61 = vector.load %arg3[%c0_10, %c0_11] : memref<1x32xf32, #tpu.memory_space<vmem>>, vector<1x32xf32>
    %62 = vector.broadcast %61 : vector<1x32xf32> to vector<16x32xf32>
    %63 = arith.addf %60, %62 : vector<16x32xf32>
    %c0_12 = arith.constant 0 : index
    %c0_13 = arith.constant 0 : index
    %64 = vector.load %arg4[%c0_12, %c0_13] : memref<16x32xf32, #tpu.memory_space<vmem>>, vector<16x32xf32>
    tpu.vector_store %arg4[%c0_12, %c0_13], %63 {strides = array<i32>} : memref<16x32xf32, #tpu.memory_space<vmem>>, vector<16x32xf32>,
    return
  }
}

</mosaic_0001>

<bundles_post_ra>
// kernel: tpu_custom_call.1
= control target key start
LH: loop header
LB: loop body
LE: loop exit
PB: predicated region body
PF: predicated region fallthrough
CT: control target
= control target key end

     0   :  { %9 = vsyncpa [#allocation3], 0  ;;  %s1799_s0 = inlined_call_operand.hbm [shape: bf16[16,32], index: 0, kind: input, shape index: {}]   ;;  %s1800_s1 = inlined_call_operand.hbm [shape: bf16[32,96], index: 1, kind: input, shape index: {}]   ;;  %s1801_s2 = inlined_call_operand.hbm [shape: bf16[32,32], index: 2, kind: input, shape index: {}]   ;;  %s1802_s3 = inlined_call_operand.vmem [shape: f32[1,32], index: 3, kind: input, shape index: {}]   ;;  %s1803_s4 = inlined_call_operand.hbm [shape: f32[16,32], index: 4, kind: output, shape index: {}]  }
   0x1   :  { %10 = vsyncpa [#allocation6], 0 }
   0x2   :  { %11 = vsyncpa [#allocation4], 0  ;;  %s1501_s15 = smov [#allocation5]   ;;  %s1502_s17 = smov [#allocation2]  }
   0x3   :  { %s29_s16 = sshll.u32 %s1501_s15, 4  ;;  %s17_s18 = sshll.u32 %s1502_s17, 4  ;;  %s30_s16 = int_to_ptr.vmem [resolvable:$true] %s29_s16  ;;  %s1542_s18 = int_to_ptr.vmem [resolvable:$true] %s17_s18 }
   0x4   :  { %s1407_s21 = scalar_lea.hbm %s1800_s1, 256 }
   0x5   :  { %p1408_p0 = scmp.ne.s32.totalorder %s1800_s1, %s1407_s21  ;;  %p1411_p1 = scmp.lt.u32.totalorder %s1407_s21, %s1800_s1 }
   0x7   :  { %p1413_p2 = pnand %p1411_p1, %p1408_p0 }
   0x9   :  { %1416 = shalt.err (!%p1413_p2)
}
   0xa   :  { %s1417_s26 = scalar_lea.vmem %s30_s16, 256  ;;  %p1422_p4 = scmp.lt.s32.totalorder %s30_s16, %s30_s16 }
   0xb   :  { %p1418_p3 = scmp.ne.s32.totalorder %s30_s16, %s1417_s26  ;;  %p1423_p5 = scmp.lt.s32.totalorder %s1417_s26, %s1417_s26 }
   0xd   :  { %p1424_p6 = por %p1423_p5, %p1422_p4 }
   0xf   :  { %p1425_p7 = pnand %p1424_p6, %p1418_p3 }
  0x11   :  { %1428 = shalt.err (!%p1425_p7)
}
  0x12   :  { %s1503_s27 = smov 64   ;;  %s1504_s28 = smov 4  }
  0x13   :  { %35 = dma.hbm_to_vmem [thread:$0]  %s1800_s1, 256, %s30_s16, [#allocation6], %s1503_s27, %s1503_s27, %s1504_s28  }
  0x14   :  { %s1429_s7 = scalar_lea.hbm %s1799_s0, 128 }
  0x15   :  { %p1430_p8 = scmp.ne.s32.totalorder %s1799_s0, %s1429_s7  ;;  %p1433_p9 = scmp.lt.u32.totalorder %s1429_s7, %s1799_s0 }
  0x17   :  { %p1435_p10 = pnand %p1433_p9, %p1430_p8 }
  0x19   :  { %1438 = shalt.err (!%p1435_p10)
}
  0x1a   :  { %s1439_s12 = scalar_lea.vmem %s1542_s18, 128  ;;  %p1444_p12 = scmp.lt.s32.totalorder %s1542_s18, %s1542_s18 }
  0x1b   :  { %p1440_p11 = scmp.ne.s32.totalorder %s1542_s18, %s1439_s12  ;;  %p1445_p13 = scmp.lt.s32.totalorder %s1439_s12, %s1439_s12 }
  0x1d   :  { %p1446_p0 = por %p1445_p13, %p1444_p12 }
  0x1f   :  { %p1447_p1 = pnand %p1446_p0, %p1440_p11 }
  0x21   :  { %1450 = shalt.err (!%p1447_p1)
}
  0x22   :  { %23 = dma.hbm_to_vmem [thread:$0]  %s1799_s0, 128, %s1542_s18, [#allocation3], %s1503_s27, %s1503_s27, %s1504_s28  }
  0x23   :  { %s1505_s14 = smov [#allocation7]   ;;  %s1451_s19 = scalar_lea.hbm %s1801_s2, 256 }
  0x24   :  { %s41_s15 = sshll.u32 %s1505_s14, 4  ;;  %p1452_p2 = scmp.ne.s32.totalorder %s1801_s2, %s1451_s19  ;;  %s42_s15 = int_to_ptr.vmem [resolvable:$true] %s41_s15 }
  0x25   :  { %p1455_p3 = scmp.lt.u32.totalorder %s1451_s19, %s1801_s2 }
  0x27   :  { %p1457_p4 = pnand %p1455_p3, %p1452_p2 }
  0x29   :  { %1460 = shalt.err (!%p1457_p4)
}
  0x2a   :  { %s1461_s24 = scalar_lea.vmem %s42_s15, 256  ;;  %p1466_p6 = scmp.lt.s32.totalorder %s42_s15, %s42_s15 }
  0x2b   :  { %p1462_p5 = scmp.ne.s32.totalorder %s42_s15, %s1461_s24  ;;  %p1467_p7 = scmp.lt.s32.totalorder %s1461_s24, %s1461_s24 }
  0x2d   :  { %p1468_p8 = por %p1467_p7, %p1466_p6 }
  0x2f   :  { %p1469_p9 = pnand %p1468_p8, %p1462_p5 }
  0x31   :  { %1472 = shalt.err (!%p1469_p9)
}
  0x32   :  { %47 = dma.hbm_to_vmem [thread:$0]  %s1801_s2, 256, %s42_s15, [#allocation6], %s1503_s27, %s1503_s27, %s1504_s28  }
  0x33   :  { %1495 = dma.done.wait [#allocation3], 128  }
  0x34   :  { %1496 = vsyncadd [#allocation3], 4294967168 }
  0x35   :  { %1497 = dma.done.wait [#allocation6], 512  }
  0x36   :  { %1498 = vsyncadd [#allocation6], 4294966784  ;;  %v1506_v0 = vmov 0.0   ;;  %vm1507_vm0 = vmmov 0   ;;  %v1370_v1 = vld [vmem:[#allocation5] sm:$0xff]   ;;  %v1371_v2 = vld [vmem:[#allocation5 + $0x8] sm:$0xff]  }
  0x37   :  { %1212 = vmatprep.subr.bf16.mxu0 %v1506_v0  ;;  %1216 = vmatprep.mubr.msk.bf16.mxu0 %vm1507_vm0, %v1506_v0  ;;  %v1372_v3 = vld [vmem:[#allocation2] sm:$0xff]   ;;  %vm83_vm1 = vcmask 261120   ;;  %s1508_s2 = smov 104   ;;  %s1509_s25 = smov 120   ;;  %vm159_vm2 = vcmask 64512   ;;  %vm650_vm3 = vcmask 1043456  }
  0x38   :  { %1220 = vmatprep.subr.bf16.mxu1 %v1506_v0  ;;  %1222 = vmatprep.mubr.msk.bf16.mxu1 %vm1507_vm0, %v1506_v0  ;;  %s1510_s26 = smov 96   ;;  %s1511_s28 = smov 112   ;;  %vm1056_vm4 = vcmask 130048   ;;  %vm1059_vm5 = vcmask 195584  }
  0x39   :  { %1213 = vmatpush3.bf16.msra.mxu0 %v1370_v1  ;;  %s1513_s29 = smov 16   ;;  %s1514_s30 = smov 24  }
  0x3a   :  { %1214 = vmatprep.subr.bf16.mxu0 %v1506_v0  ;;  %s1515_s7 = smov [#allocation8]  }
  0x3b   :  { %s1137_s8 = sshll.u32 %s1515_s7, 4  ;;  %s1138_s8 = int_to_ptr.vmem [resolvable:$true] %s1137_s8 }
  0x3c   :  { %s1473_s9 = scalar_lea.vmem %s1138_s8, 256  ;;  %p1478_p11 = scmp.lt.s32.totalorder %s1138_s8, %s1138_s8 }
  0x3d   :  { %1215 = vmatpush3.bf16.msra.mxu0 %v1371_v2  ;;  %p1474_p10 = scmp.ne.s32.totalorder %s1138_s8, %s1473_s9  ;;  %p1479_p12 = scmp.lt.s32.totalorder %s1473_s9, %s1473_s9 }
  0x3e   :  { %1226 = vmatprep.subr.bf16.mxu0 %v1506_v0 }
  0x3f   :  { %p1480_p13 = por %p1479_p12, %p1478_p11 }
  0x40   :  { %1217 = vmatmul.mubr.msk.bf16.vlgmr.msra.gmra.mrb[0].mxu0 %vm83_vm1, %v1372_v3 }
  0x41   :  { %1228 = vmatprep.mubr.msk.bf16.mxu0 %vm1507_vm0, %v1506_v0  ;;  %p1481_p0 = pnand %p1480_p13, %p1474_p10 }
 0x113   :  { %v121_v4 = vpop.f32.mrb[0].mxu0 }
 0x114   :  { %v1218_v5 = vpop.f32.mrb[1].mxu0  ;;  %v148_v9 = vpack.c.bf16 %v121_v4, %v121_v4 }
 0x115   :  { %v124_v6 = vpop.f32.mrb[2].mxu0 }
 0x116   :  { %v1219_v7 = vpop.f32.mrb[3].mxu0  ;;  %v1350_v8 = vpack.i.bf16 %v124_v6, %v121_v4  ;;  %v149_v10 = vpack.c.bf16 %v124_v6, %v124_v6 }
 0x118   :  { %1351 = vrot.lane.b32.xlu1 %v1350_v8, %s1508_s2  ;;  %1341 = vrot.lane.b32.xlu0 %v1350_v8, %s1509_s25 }
 0x11c   :  { %157 = vrot.lane.b32.xlu1 %v148_v9, %s1510_s26  ;;  %1346 = vrot.lane.b32.xlu0 %v1350_v8, %s1511_s28 }
 0x120   :  { %207 = vrot.lane.b32.xlu0 %v149_v10, %s1510_s26 }
 0x18a   :  { %v1352_v11 = vpop.permute.xlu1 %1351  ;;  %v1342_v12 = vpop.permute.xlu0 %1341 }
 0x18b   :  { %v1344_v13 = vunpack.i.h.bf16 %v1342_v12  ;;  %v1343_v14 = vunpack.i.l.bf16 %v1342_v12  ;;  %v1353_v22 = vunpack.i.l.bf16 %v1352_v11  ;;  %v1354_v25 = vunpack.i.h.bf16 %v1352_v11 }
 0x18d   :  { %v1607_v15 = vpack.c.bf16 %v1344_v13, %v1344_v13  ;;  %v1609_v16 = vpack.c.bf16 %v1343_v14, %v1343_v14  ;;  %v1626_v28 = vpack.c.bf16 %v1353_v22, %v1353_v22  ;;  %v1629_v29 = vpack.c.bf16 %v1354_v25, %v1354_v25 }
 0x18e   :  { %v158_v17 = vpop.permute.xlu1 %157  ;;  %v1347_v18 = vpop.permute.xlu0 %1346 }
 0x18f   :  { %v1349_v19 = vunpack.i.h.bf16 %v1347_v18  ;;  %v1348_v20 = vunpack.i.l.bf16 %v1347_v18  ;;  %256 = vrot.lane.b32.xlu1 %v1609_v16, %s1510_s26  ;;  %305 = vrot.lane.b32.xlu0 %v1607_v15, %s1510_s26  ;;  %v164_v21 = vsel %vm159_vm2, %v158_v17, 0 }
 0x190   :  { %1221 = vmatpush3.bf16.xpose.msra.mxu1 %v164_v21 }
 0x191   :  { %v1616_v23 = vpack.c.bf16 %v1349_v19, %v1349_v19  ;;  %v1618_v24 = vpack.c.bf16 %v1348_v20, %v1348_v20  ;;  %1232 = vmatprep.subr.bf16.mxu1 %v1506_v0 }
 0x192   :  { %v208_v26 = vpop.permute.xlu0 %207 }
 0x193   :  { %v213_v27 = vsel %vm159_vm2, %v208_v26, 0  ;;  %354 = vrot.lane.b32.xlu1 %v1618_v24, %s1510_s26  ;;  %403 = vrot.lane.b32.xlu0 %v1616_v23, %s1510_s26 }
 0x194   :  { %1227 = vmatpush3.bf16.xpose.msra.mxu0 %v213_v27 }
 0x195   :  { %1238 = vmatprep.subr.bf16.mxu0 %v1506_v0 }
 0x197   :  { %1223 = vmatmul.mubr.msk.bf16.vlgmr.msra.gmra.mrb[0].mxu1 %vm159_vm2, %v148_v9  ;;  %452 = vrot.lane.b32.xlu1 %v1626_v28, %s1510_s26 }
 0x198   :  { %501 = vrot.lane.b32.xlu0 %v1629_v29, %s1510_s26  ;;  %1234 = vmatprep.mubr.msk.bf16.mxu1 %vm1507_vm0, %v1506_v0 }
 0x19b   :  { %694 = vrot.lane.b32.xlu1 %v149_v10, %s1503_s27  ;;  %1229 = vmatmul.mubr.msk.bf16.vlgmr.msra.gmra.mrb[4].mxu0 %vm159_vm2, %v149_v10 }
 0x19c   :  { %645 = vrot.lane.b32.xlu0 %v148_v9, %s1503_s27  ;;  %1240 = vmatprep.mubr.msk.bf16.mxu0 %vm1507_vm0, %v1506_v0 }
 0x201   :  { %v257_v30 = vpop.permute.xlu1 %256  ;;  %v306_v31 = vpop.permute.xlu0 %305 }
 0x202   :  { %v262_v32 = vsel %vm159_vm2, %v257_v30, 0  ;;  %v311_v33 = vsel %vm159_vm2, %v306_v31, 0 }
 0x203   :  { %1233 = vmatpush3.bf16.xpose.msra.mxu1 %v262_v32  ;;  %1239 = vmatpush3.bf16.xpose.msra.mxu0 %v311_v33 }
 0x204   :  { %1244 = vmatprep.subr.bf16.mxu1 %v1506_v0  ;;  %1250 = vmatprep.subr.bf16.mxu0 %v1506_v0 }
 0x205   :  { %v355_v34 = vpop.permute.xlu1 %354  ;;  %v404_v35 = vpop.permute.xlu0 %403 }
 0x206   :  { %v360_v36 = vsel %vm159_vm2, %v355_v34, 0  ;;  %v409_v37 = vsel %vm159_vm2, %v404_v35, 0 }
 0x209   :  { %v453_v38 = vpop.permute.xlu1 %452 }
 0x20a   :  { %1235 = vmatmul.mubr.msk.bf16.vlgmr.msra.gmra.mrb[4].mxu1 %vm159_vm2, %v1609_v16  ;;  %1241 = vmatmul.mubr.msk.bf16.vlgmr.msra.gmra.mrb[8].mxu0 %vm159_vm2, %v1607_v15  ;;  %v502_v39 = vpop.permute.xlu0 %501  ;;  %v458_v40 = vsel %vm159_vm2, %v453_v38, 0 }
 0x20b   :  { %1245 = vmatpush3.bf16.xpose.msra.mxu1 %v360_v36  ;;  %1251 = vmatpush3.bf16.xpose.msra.mxu0 %v409_v37  ;;  %v507_v41 = vsel %vm159_vm2, %v502_v39, 0 }
 0x20c   :  { %1246 = vmatprep.mubr.msk.bf16.mxu1 %vm1507_vm0, %v1506_v0  ;;  %1252 = vmatprep.mubr.msk.bf16.mxu0 %vm1507_vm0, %v1506_v0 }
 0x20d   :  { %1256 = vmatprep.subr.bf16.mxu1 %v1506_v0  ;;  %1262 = vmatprep.subr.bf16.mxu0 %v1506_v0  ;;  %v695_v42 = vpop.permute.xlu1 %694 }
 0x20e   :  { %v646_v43 = vpop.permute.xlu0 %645  ;;  %v700_v44 = vsel %vm650_vm3, %v695_v42, 0 }
 0x20f   :  { %v652_v45 = vsel %vm650_vm3, %v646_v43, 0 }
 0x212   :  { %1247 = vmatmul.mubr.msk.bf16.vlgmr.msra.gmra.mrb[8].mxu1 %vm159_vm2, %v1618_v24  ;;  %1253 = vmatmul.mubr.msk.bf16.vlgmr.msra.gmra.mrb[12].mxu0 %vm159_vm2, %v1616_v23 }
 0x213   :  { %1257 = vmatpush3.bf16.xpose.msra.mxu1 %v458_v40  ;;  %1263 = vmatpush3.bf16.xpose.msra.mxu0 %v507_v41 }
 0x214   :  { %1258 = vmatprep.mubr.msk.bf16.mxu1 %vm1507_vm0, %v1506_v0  ;;  %1264 = vmatprep.mubr.msk.bf16.mxu0 %vm1507_vm0, %v1506_v0 }
 0x215   :  { %1268 = vmatprep.subr.bf16.mxu1 %v1506_v0  ;;  %1274 = vmatprep.subr.bf16.mxu0 %v1506_v0 }
 0x21a   :  { %1259 = vmatmul.mubr.msk.bf16.vlgmr.msra.gmra.mrb[12].mxu1 %vm159_vm2, %v1626_v28  ;;  %1265 = vmatmul.mubr.msk.bf16.vlgmr.msra.gmra.mrb[16].mxu0 %vm159_vm2, %v1629_v29 }
 0x21b   :  { %1269 = vmatpush3.bf16.msra.mxu1 %v652_v45  ;;  %1275 = vmatpush3.bf16.msra.mxu0 %v700_v44 }
 0x21c   :  { %1270 = vmatprep.mubr.msk.bf16.mxu1 %vm1507_vm0, %v1506_v0  ;;  %1276 = vmatprep.mubr.msk.bf16.mxu0 %vm1507_vm0, %v1506_v0 }
 0x21d   :  { %1280 = vmatprep.subr.bf16.mxu1 %v1506_v0  ;;  %1286 = vmatprep.subr.bf16.mxu0 %v1506_v0 }
 0x26a   :  { %v200_v46 = vpop.f32.mrb[0].mxu1 }
 0x26b   :  { %v1224_v47 = vpop.f32.mrb[1].mxu1  ;;  %v549_v48 = vsel %vm159_vm2, %v200_v46, -inf }
 0x26c   :  { %v203_v49 = vpop.f32.mrb[2].mxu1  ;;  %550 = vmax.xlane.f32.xlu1 %v549_v48 }
 0x26d   :  { %v1225_v50 = vpop.f32.mrb[3].mxu1 }
 0x26e   :  { %v249_v51 = vpop.f32.mrb[4].mxu0 }
 0x26f   :  { %v1230_v52 = vpop.f32.mrb[5].mxu0  ;;  %v552_v53 = vsel %vm159_vm2, %v249_v51, -inf }
 0x270   :  { %553 = vmax.xlane.f32.xlu0 %v552_v53  ;;  %v252_v54 = vpop.f32.mrb[6].mxu0 }
 0x271   :  { %v1231_v55 = vpop.f32.mrb[7].mxu0 }
 0x2dd   :  { %v298_v56 = vpop.f32.mrb[4].mxu1  ;;  %v347_v57 = vpop.f32.mrb[8].mxu0 }
 0x2de   :  { %v1236_v58 = vpop.f32.mrb[5].mxu1  ;;  %v1242_v59 = vpop.f32.mrb[9].mxu0  ;;  %v555_v60 = vsel %vm159_vm2, %v298_v56, -inf  ;;  %v558_v61 = vsel %vm159_vm2, %v347_v57, -inf }
 0x2df   :  { %v301_v62 = vpop.f32.mrb[6].mxu1  ;;  %556 = vmax.xlane.f32.xlu0 %v555_v60  ;;  %559 = vmax.xlane.f32.xlu1 %v558_v61  ;;  %v350_v63 = vpop.f32.mrb[10].mxu0 }
 0x2e0   :  { %v1237_v1 = vpop.f32.mrb[7].mxu1  ;;  %v1243_v2 = vpop.f32.mrb[11].mxu0 }
 0x2e5   :  { %v1687_v3 = vpop.f32.mrb[8].mxu1  ;;  %v445_v4 = vpop.f32.mrb[12].mxu0 }
 0x2e6   :  { %v1248_v5 = vpop.f32.mrb[9].mxu1  ;;  %v1254_v6 = vpop.f32.mrb[13].mxu0  ;;  %v561_v7 = vsel %vm159_vm2, %v1687_v3, -inf  ;;  %v564_v8 = vsel %vm159_vm2, %v445_v4, -inf }
 0x2e7   :  { %v399_v9 = vpop.f32.mrb[10].mxu1  ;;  %562 = vmax.xlane.f32.xlu0 %v561_v7  ;;  %565 = vmax.xlane.f32.xlu1 %v564_v8  ;;  %v448_v10 = vpop.f32.mrb[14].mxu0 }
 0x2e8   :  { %v1249_v11 = vpop.f32.mrb[11].mxu1  ;;  %v1255_v12 = vpop.f32.mrb[15].mxu0 }
 0x2ed   :  { %v1692_v13 = vpop.f32.mrb[12].mxu1  ;;  %v543_v14 = vpop.f32.mrb[16].mxu0 }
 0x2ee   :  { %v1260_v17 = vpop.f32.mrb[13].mxu1  ;;  %v1266_v18 = vpop.f32.mrb[17].mxu0  ;;  %v567_v19 = vsel %vm159_vm2, %v1692_v13, -inf  ;;  %v570_v20 = vsel %vm159_vm2, %v543_v14, -inf }
 0x2ef   :  { %v497_v21 = vpop.f32.mrb[14].mxu1  ;;  %568 = vmax.xlane.f32.xlu0 %v567_v19  ;;  %571 = vmax.xlane.f32.xlu1 %v570_v20  ;;  %v546_v22 = vpop.f32.mrb[18].mxu0 }
 0x2f0   :  { %v1261_v25 = vpop.f32.mrb[15].mxu1  ;;  %v1267_v26 = vpop.f32.mrb[19].mxu0 }
 0x2f9   :  { %v551_v27 = vpop.xlane.xlu1 %550 }
 0x2fa   :  { %v573_v31 = vsub.f32 %v200_v46, %v551_v27 }
 0x2fc   :  { %v581_v33 = vmul.f32 1.442695, %v573_v31 }
 0x2fd   :  { %v554_v30 = vpop.xlane.xlu0 %553 }
 0x2fe   :  { %v574_v32 = vsub.f32 %v249_v51, %v554_v30  ;;  %1375 = vpow2.f32 %v581_v33 }
 0x300   :  { %742 = vrot.lane.b32.xlu1 %v1609_v16, %s1503_s27  ;;  %v583_v34 = vmul.f32 1.442695, %v574_v32 }
 0x302   :  { %1377 = vpow2.f32 %v583_v34 }
 0x305   :  { %790 = vrot.lane.b32.xlu0 %v1607_v15, %s1503_s27 }
 0x308   :  { %v1376_v35 = vpop.eup %1375 }
 0x309   :  { %v597_v37 = vsel %vm159_vm2, %v1376_v35, 0.0 }
 0x30c   :  { %v1378_v36 = vpop.eup %1377 }
 0x30d   :  { %v600_v38 = vsel %vm159_vm2, %v1378_v36, 0.0 }
 0x324   :  { %598 = vadd.xlane.f32.xlu0 %v597_v37  ;;  %601 = vadd.xlane.f32.xlu1 %v600_v38 }
 0x335   :  { %838 = vrot.lane.b32.xlu1 %v1618_v24, %s1503_s27 }
 0x36c   :  { %v557_v15 = vpop.xlane.xlu0 %556  ;;  %v560_v16 = vpop.xlane.xlu1 %559 }
 0x36d   :  { %v575_v39 = vsub.f32 %v298_v56, %v557_v15  ;;  %v576_v40 = vsub.f32 %v347_v57, %v560_v16 }
 0x36f   :  { %v585_v41 = vmul.f32 1.442695, %v575_v39  ;;  %v587_v42 = vmul.f32 1.442695, %v576_v40 }
 0x371   :  { %1379 = vpow2.f32 %v585_v41 }
 0x372   :  { %1381 = vpow2.f32 %v587_v42 }
 0x374   :  { %v566_v43 = vpop.xlane.xlu1 %565  ;;  %v563_v56 = vpop.xlane.xlu0 %562 }
 0x375   :  { %v578_v44 = vsub.f32 %v445_v4, %v566_v43  ;;  %v577_v57 = vsub.f32 %v1687_v3, %v563_v56 }
 0x377   :  { %v591_v45 = vmul.f32 1.442695, %v578_v44  ;;  %v589_v59 = vmul.f32 1.442695, %v577_v57 }
 0x379   :  { %1383 = vpow2.f32 %v591_v45 }
 0x37b   :  { %v1705_v46 = vpop.eup %1379 }
 0x37c   :  { %v1707_v47 = vpop.eup %1381  ;;  %v572_v48 = vpop.xlane.xlu1 %571  ;;  %v603_v24 = vsel %vm159_vm2, %v1705_v46, 0.0 }
 0x37d   :  { %v580_v49 = vsub.f32 %v543_v14, %v572_v48  ;;  %604 = vadd.xlane.f32.xlu0 %v603_v24  ;;  %v606_v50 = vsel %vm159_vm2, %v1707_v47, 0.0  ;;  %v569_v58 = vpop.xlane.xlu0 %568 }
 0x37e   :  { %607 = vadd.xlane.f32.xlu1 %v606_v50  ;;  %v579_v60 = vsub.f32 %v1692_v13, %v569_v58 }
 0x37f   :  { %v595_v51 = vmul.f32 1.442695, %v580_v49 }
 0x380   :  { %v593_v61 = vmul.f32 1.442695, %v579_v60  ;;  %v743_v63 = vpop.permute.xlu1 %742 }
 0x381   :  { %1385 = vpow2.f32 %v595_v51  ;;  %v791_v62 = vpop.permute.xlu0 %790  ;;  %v748_v11 = vsel %vm650_vm3, %v743_v63, 0 }
 0x382   :  { %1387 = vpow2.f32 %v589_v59  ;;  %v796_v12 = vsel %vm650_vm3, %v791_v62, 0 }
 0x383   :  { %v1713_v52 = vpop.eup %1383  ;;  %1389 = vpow2.f32 %v593_v61 }
 0x384   :  { %v612_v53 = vsel %vm159_vm2, %v1713_v52, 0.0 }
 0x385   :  { %613 = vadd.xlane.f32.xlu1 %v612_v53 }
 0x38b   :  { %v1717_v54 = vpop.eup %1385 }
 0x38c   :  { %v618_v55 = vsel %vm159_vm2, %v1717_v54, 0.0  ;;  %v1727_v1 = vpop.eup %1387 }
 0x38d   :  { %619 = vadd.xlane.f32.xlu1 %v618_v55  ;;  %v1731_v3 = vpop.eup %1389 }
 0x393   :  { %886 = vrot.lane.b32.xlu0 %v1616_v23, %s1503_s27  ;;  %v609_v23 = vsel %vm159_vm2, %v1727_v1, 0.0 }
 0x39e   :  { %934 = vrot.lane.b32.xlu1 %v1626_v28, %s1503_s27  ;;  %v615_v28 = vsel %vm159_vm2, %v1731_v3, 0.0 }
 0x3b1   :  { %v599_v2 = vpop.xlane.xlu0 %598  ;;  %v602_v4 = vpop.xlane.xlu1 %601 }
 0x3b2   :  { %1391 = vrcp.f32 %v599_v2  ;;  %610 = vadd.xlane.f32.xlu0 %v609_v23 }
 0x3b3   :  { %1393 = vrcp.f32 %v602_v4 }
 0x3b5   :  { %v839_v13 = vpop.permute.xlu1 %838 }
 0x3b6   :  { %616 = vadd.xlane.f32.xlu0 %v615_v28  ;;  %v844_v30 = vsel %vm650_vm3, %v839_v13, 0 }
 0x3bc   :  { %v1392_v5 = vpop.eup %1391 }
 0x3bd   :  { %v1394_v6 = vpop.eup %1393  ;;  %v622_v7 = vmul.f32 %v1392_v5, %v1376_v35 }
 0x3be   :  { %v624_v8 = vmul.f32 %v1394_v6, %v1378_v36 }
 0x3bf   :  { %v637_v9 = vpack.c.bf16 %v622_v7, %v622_v7 }
 0x3c0   :  { %v638_v10 = vpack.c.bf16 %v624_v8, %v624_v8 }
 0x3c1   :  { %1271 = vmatmul.mubr.msk.bf16.vlgmr.msra.gmra.mrb[16].mxu1 %vm159_vm2, %v637_v9  ;;  %v1374_v9 = vld [vmem:[#allocation7 + $0x8] sm:$0xff]  }
 0x3c2   :  { %1277 = vmatmul.mubr.msk.bf16.vlgmr.msra.gmra.mrb[20].mxu0 %vm159_vm2, %v638_v10  ;;  %1281 = vmatpush3.bf16.msra.mxu1 %v748_v11 }
 0x3c3   :  { %1287 = vmatpush3.bf16.msra.mxu0 %v796_v12  ;;  %1282 = vmatprep.mubr.msk.bf16.mxu1 %vm1507_vm0, %v1506_v0 }
 0x3c4   :  { %1288 = vmatprep.mubr.msk.bf16.mxu0 %vm1507_vm0, %v1506_v0  ;;  %1292 = vmatprep.subr.bf16.mxu1 %v1506_v0 }
 0x3c5   :  { %1298 = vmatprep.subr.bf16.mxu0 %v1506_v0 }
 0x3cc   :  { %982 = vrot.lane.b32.xlu0 %v1629_v29, %s1503_s27  ;;  %s1512_s27 = smov 8  }
 0x40a   :  { %v605_v14 = vpop.xlane.xlu0 %604 }
 0x40b   :  { %1395 = vrcp.f32 %v605_v14  ;;  %v608_v17 = vpop.xlane.xlu1 %607 }
 0x40c   :  { %1397 = vrcp.f32 %v608_v17 }
 0x40e   :  { %v887_v25 = vpop.permute.xlu0 %886 }
 0x40f   :  { %v892_v29 = vsel %vm650_vm3, %v887_v25, 0 }
 0x412   :  { %v614_v18 = vpop.xlane.xlu1 %613 }
 0x413   :  { %1399 = vrcp.f32 %v614_v18 }
 0x415   :  { %v1396_v19 = vpop.eup %1395 }
 0x416   :  { %v1398_v20 = vpop.eup %1397  ;;  %v626_v21 = vmul.f32 %v1396_v19, %v1705_v46 }
 0x417   :  { %v628_v22 = vmul.f32 %v1398_v20, %v1707_v47 }
 0x418   :  { %v639_v26 = vpack.c.bf16 %v626_v21, %v626_v21 }
 0x419   :  { %v640_v27 = vpack.c.bf16 %v628_v22, %v628_v22 }
 0x41a   :  { %1283 = vmatmul.mubr.msk.bf16.vlgmr.msra.gmra.mrb[20].mxu1 %vm159_vm2, %v639_v26  ;;  %v620_v34 = vpop.xlane.xlu1 %619 }
 0x41b   :  { %1289 = vmatmul.mubr.msk.bf16.vlgmr.msra.gmra.mrb[24].mxu0 %vm159_vm2, %v640_v27  ;;  %1293 = vmatpush3.bf16.msra.mxu1 %v844_v30  ;;  %1401 = vrcp.f32 %v620_v34 }
 0x41c   :  { %1299 = vmatpush3.bf16.msra.mxu0 %v892_v29  ;;  %1300 = vmatprep.mubr.msk.bf16.mxu0 %vm1507_vm0, %v1506_v0 }
 0x41d   :  { %1310 = vmatprep.subr.bf16.mxu0 %v1506_v0  ;;  %1294 = vmatprep.mubr.msk.bf16.mxu1 %vm1507_vm0, %v1506_v0  ;;  %v1400_v31 = vpop.eup %1399 }
 0x41e   :  { %1304 = vmatprep.subr.bf16.mxu1 %v1506_v0  ;;  %v632_v32 = vmul.f32 %v1400_v31, %v1713_v52  ;;  %v935_v42 = vpop.permute.xlu1 %934 }
 0x41f   :  { %v940_v45 = vsel %vm650_vm3, %v935_v42, 0 }
 0x420   :  { %v642_v33 = vpack.c.bf16 %v632_v32, %v632_v32 }
 0x423   :  { %1301 = vmatmul.mubr.msk.bf16.vlgmr.msra.gmra.mrb[28].mxu0 %vm159_vm2, %v642_v33 }
 0x424   :  { %1312 = vmatprep.mubr.msk.bf16.mxu0 %vm1507_vm0, %v1506_v0 }
 0x425   :  { %v1402_v36 = vpop.eup %1401 }
 0x426   :  { %v636_v38 = vmul.f32 %v1402_v36, %v1717_v54 }
 0x428   :  { %v644_v40 = vpack.c.bf16 %v636_v38, %v636_v38 }
 0x43f   :  { %v611_v35 = vpop.xlane.xlu0 %610 }
 0x440   :  { %1403 = vrcp.f32 %v611_v35 }
 0x443   :  { %v617_v37 = vpop.xlane.xlu0 %616 }
 0x444   :  { %1405 = vrcp.f32 %v617_v37 }
 0x447   :  { %v983_v15 = vpop.permute.xlu0 %982 }
 0x448   :  { %v988_v16 = vsel %vm650_vm3, %v983_v15, 0  ;;  %v1170_v15 = vld [vmem:[%s1802_s3] ss:$0 sm:$0xff] }
 0x449   :  { %1311 = vmatpush3.bf16.msra.mxu0 %v988_v16 }
 0x44a   :  { %v1404_v39 = vpop.eup %1403 }
 0x44b   :  { %v630_v41 = vmul.f32 %v1404_v39, %v1727_v1 }
 0x44c   :  { %1313 = vmatmul.mubr.msk.bf16.vlgmr.msra.gmra.mrb[32].mxu0 %vm159_vm2, %v644_v40 }
 0x44d   :  { %v641_v43 = vpack.c.bf16 %v630_v41, %v630_v41 }
 0x44e   :  { %v1406_v44 = vpop.eup %1405 }
 0x44f   :  { %1295 = vmatmul.mubr.msk.bf16.vlgmr.msra.gmra.mrb[24].mxu1 %vm159_vm2, %v641_v43  ;;  %v634_v46 = vmul.f32 %v1406_v44, %v1731_v3  ;;  %v1373_v3 = vld [vmem:[#allocation7] sm:$0xff]  }
 0x450   :  { %1305 = vmatpush3.bf16.msra.mxu1 %v940_v45  ;;  %1306 = vmatprep.mubr.msk.bf16.mxu1 %vm1507_vm0, %v1506_v0 }
 0x451   :  { %1316 = vmatprep.subr.bf16.mxu1 %v1506_v0  ;;  %v643_v47 = vpack.c.bf16 %v634_v46, %v634_v46 }
 0x457   :  { %1307 = vmatmul.mubr.msk.bf16.vlgmr.msra.gmra.mrb[28].mxu1 %vm159_vm2, %v643_v47 }
 0x458   :  { %1320 = vmatprep.mubr.msk.bf16.mxu1 %vm1507_vm0, %v1506_v0  ;;  %1317 = vmatpush3.bf16.msra.mxu1 %v1373_v3 }
 0x459   :  { %1318 = vmatprep.subr.bf16.mxu1 %v1506_v0 }
 0x45c   :  { %1319 = vmatpush3.bf16.msra.mxu1 %v1374_v9 }
 0x494   :  { %v688_v48 = vpop.f32.mrb[16].mxu1 }
 0x495   :  { %v736_v24 = vpop.f32.mrb[20].mxu0  ;;  %v1272_v49 = vpop.f32.mrb[17].mxu1 }
 0x496   :  { %v1278_v50 = vpop.f32.mrb[21].mxu0  ;;  %v691_v51 = vpop.f32.mrb[18].mxu1 }
 0x497   :  { %v739_v52 = vpop.f32.mrb[22].mxu0  ;;  %v1273_v53 = vpop.f32.mrb[19].mxu1 }
 0x498   :  { %v1279_v54 = vpop.f32.mrb[23].mxu0 }
 0x4ed   :  { %v784_v55 = vpop.f32.mrb[20].mxu1 }
 0x4ee   :  { %v832_v56 = vpop.f32.mrb[24].mxu0  ;;  %v1284_v57 = vpop.f32.mrb[21].mxu1 }
 0x4ef   :  { %v1355_v58 = vpack.i.bf16 %v832_v56, %v784_v55  ;;  %v1290_v59 = vpop.f32.mrb[25].mxu0  ;;  %v787_v60 = vpop.f32.mrb[22].mxu1 }
 0x4f0   :  { %v835_v61 = vpop.f32.mrb[26].mxu0  ;;  %v1285_v62 = vpop.f32.mrb[23].mxu1 }
 0x4f1   :  { %1356 = vrot.lane.b32.xlu1 %v1355_v58, %s1512_s27  ;;  %v1291_v63 = vpop.f32.mrb[27].mxu0 }
 0x4f6   :  { %v928_v1 = vpop.f32.mrb[28].mxu0 }
 0x4f7   :  { %v1302_v2 = vpop.f32.mrb[29].mxu0 }
 0x4f8   :  { %v931_v4 = vpop.f32.mrb[30].mxu0 }
 0x4f9   :  { %v1303_v23 = vpop.f32.mrb[31].mxu0 }
 0x51f   :  { %v1024_v28 = vpop.f32.mrb[32].mxu0 }
 0x520   :  { %v1314_v5 = vpop.f32.mrb[33].mxu0 }
 0x521   :  { %v1027_v6 = vpop.f32.mrb[34].mxu0 }
 0x522   :  { %v880_v7 = vpop.f32.mrb[24].mxu1  ;;  %v1315_v8 = vpop.f32.mrb[35].mxu0 }
 0x523   :  { %v1360_v10 = vpack.i.bf16 %v928_v1, %v880_v7  ;;  %v1296_v11 = vpop.f32.mrb[25].mxu1 }
 0x524   :  { %v883_v12 = vpop.f32.mrb[26].mxu1 }
 0x525   :  { %v1297_v13 = vpop.f32.mrb[27].mxu1  ;;  %1361 = vrot.lane.b32.xlu0 %v1360_v10, %s1513_s29 }
 0x52a   :  { %v976_v14 = vpop.f32.mrb[28].mxu1 }
 0x52b   :  { %v1365_v17 = vpack.i.bf16 %v1024_v28, %v976_v14  ;;  %v1308_v18 = vpop.f32.mrb[29].mxu1 }
 0x52c   :  { %v979_v19 = vpop.f32.mrb[30].mxu1 }
 0x52d   :  { %v1309_v20 = vpop.f32.mrb[31].mxu1  ;;  %1366 = vrot.lane.b32.xlu1 %v1365_v17, %s1514_s30 }
 0x563   :  { %v1357_v0 = vpop.permute.xlu1 %1356 }
 0x564   :  { %v1359_v22 = vunpack.i.h.bf16 %v1357_v0  ;;  %v1358_v25 = vunpack.i.l.bf16 %v1357_v0 }
 0x566   :  { %v1055_v29 = vsel %vm159_vm2, %v736_v24, %v1359_v22  ;;  %v1054_v31 = vsel %vm159_vm2, %v688_v48, %v1358_v25 }
 0x597   :  { %v1362_v21 = vpop.permute.xlu0 %1361 }
 0x598   :  { %v1364_v26 = vunpack.i.h.bf16 %v1362_v21  ;;  %v1363_v27 = vunpack.i.l.bf16 %v1362_v21 }
 0x59a   :  { %v1058_v34 = vsel %vm1056_vm4, %v1055_v29, %v1364_v26  ;;  %v1057_v35 = vsel %vm1056_vm4, %v1054_v31, %v1363_v27 }
 0x59f   :  { %v1367_v30 = vpop.permute.xlu1 %1366 }
 0x5a0   :  { %v1369_v32 = vunpack.i.h.bf16 %v1367_v30  ;;  %v1368_v33 = vunpack.i.l.bf16 %v1367_v30 }
 0x5a2   :  { %v1061_v36 = vsel %vm1059_vm5, %v1058_v34, %v1369_v32  ;;  %v1060_v37 = vsel %vm1059_vm5, %v1057_v35, %v1368_v33 }
 0x5a3   :  { %v1062_v38 = vpack.c.bf16 %v1061_v36, %v1060_v37 }
 0x5a5   :  { %1321 = vmatmul.mubr.msk.bf16.vlgmr.msra.gmra.mrb[32].mxu1 %vm83_vm1, %v1062_v38 }
 0x678   :  { %v1123_v16 = vpop.f32.mrb[32].mxu1 }
 0x679   :  { %v1124_v39 = vadd.f32 %v1170_v15, %v1123_v16  ;;  %v1322_v40 = vpop.f32.mrb[33].mxu1 }
 0x67a   :  { %v1126_v41 = vpop.f32.mrb[34].mxu1 }
 0x67b   :  { %1130 = vst.msk [vmem:[#allocation8] sm:$0xff] %vm83_vm1, %v1124_v39  ;;  %v1127_v42 = vadd.f32 %v1170_v15, %v1126_v41  ;;  %v1323_v43 = vpop.f32.mrb[35].mxu1 }
 0x67d   :  { %1131 = vst.msk [vmem:[#allocation8 + $0x8] sm:$0xff] %vm83_vm1, %v1127_v42 }
 0x67e   :  { %1484 = shalt.err (!%p1481_p0)
}
 0x67f   :  { %s1485_s11 = scalar_lea.hbm %s1803_s4, 256 }
 0x680   :  { %p1486_p1 = scmp.ne.s32.totalorder %s1803_s4, %s1485_s11  ;;  %p1489_p2 = scmp.lt.u32.totalorder %s1485_s11, %s1803_s4 }
 0x682   :  { %p1491_p3 = pnand %p1489_p2, %p1486_p1 }
 0x684   :  { %1494 = shalt.err (!%p1491_p3)
}
 0x685   :  { %s1516_s15 = smov 128  }
 0x686   :  { %1143 = dma.vmem_to_hbm [thread:$0]  %s1138_s8, 256, %s1803_s4, [#allocation4], %s1516_s15, %s1516_s15, %s1512_s27  }
 0x687   :  { %1499 = dma.done.wait [#allocation4], 256  }
 0x688   :  { %1500 = vsyncadd [#allocation4], 4294967040 }
 0x689   :  { %1147 = vsyncpa [#allocation3], 1 }
 0x68a   :  { %1148 = vsyncpa [#allocation6], 1 }
 0x68b   :  { %1149 = vsyncpa [#allocation4], 1 }

</bundles_post_ra>
